<compile_context>
chip_gen: v7x
topology: tpu7x:2x2x1
jax: 0.10.0
libtpu: 0.0.40
codegen_flags: <defaults>
</compile_context>

<pallas_src>
import functools

import jax
import jax.numpy as jnp
from jax import lax
from jax.experimental import pallas as pl
from jax.experimental.pallas import tpu as pltpu


def _ce_loss_kernel(logits_ref, targets_ref, partial_ref, m_sc, l_sc, p_sc, *,
                    n_valid, num_classes, block_rows, block_cols, mask_cols):
    """Streaming CE over one (block_rows, block_cols) tile.

    Grid = (row blocks [parallel], class blocks [arbitrary/reduction]).
    Scratch carries the running max / running sum-of-exp / picked target logit
    across the class axis; the per-row-block partial loss sum is written to a
    (1, 1) SMEM block on the last class step.
    """
    i = pl.program_id(0)
    k = pl.program_id(1)
    nk = pl.num_programs(1)

    @pl.when(k == 0)
    def _():
        m_sc[...] = jnp.full_like(m_sc, -jnp.inf)
        l_sc[...] = jnp.zeros_like(l_sc)
        p_sc[...] = jnp.zeros_like(p_sc)

    x = logits_ref[...].astype(jnp.float32)        # (TN, TK) upcast in-register
    t = targets_ref[...]                           # (TN, 1) int32

    # (1, TK) class-index vector; comparisons below broadcast across sublanes,
    # so no full (TN, TK) int32 iota is materialized.
    col = lax.broadcasted_iota(jnp.int32, (1, block_cols), 1) + k * block_cols

    if mask_cols:
        # Ragged last class block: drop garbage columns from max / exp-sum.
        x = jnp.where(col < num_classes, x, -jnp.inf)

    # Pick the target logit straight from x (each target id lands in exactly
    # one class block, so accumulation across k is a plain sum).
    p_sc[...] += jnp.sum(jnp.where(col == t, x, 0.0), axis=-1, keepdims=True)

    # Online, numerically stable logsumexp.
    m_prev = m_sc[...]
    m_new = jnp.maximum(m_prev, jnp.max(x, axis=-1, keepdims=True))
    l_sc[...] = (l_sc[...] * jnp.exp(m_prev - m_new)
                 + jnp.sum(jnp.exp(x - m_new), axis=-1, keepdims=True))
    m_sc[...] = m_new

    @pl.when(k == nk - 1)
    def _():
        per_row = m_sc[...] + jnp.log(l_sc[...]) - p_sc[...]       # (TN, 1)
        # Ragged last row block: rows >= n_valid hold undefined data; use a
        # select (NOT a multiply) so NaN/Inf in garbage rows cannot leak in.
        row = lax.broadcasted_iota(jnp.int32, (block_rows, 1), 0) + i * block_rows
        per_row = jnp.where(row < n_valid, per_row, 0.0)
        partial_ref[0, 0] = jnp.sum(per_row)


def _vmem_capacity_bytes():
    try:
        return int(pltpu.get_tpu_info().vmem_capacity_bytes)
    except Exception:
        return 64 * 2 ** 20            # conservative default (v7x per-TC VMEM)


def _choose_tiles(n, c, itemsize):
    """Pick (block_rows, block_cols) from the actual VMEM capacity."""
    vmem_cap = _vmem_capacity_bytes()
    budget = int(0.70 * vmem_cap)      # headroom for compiler temps / metadata

    def per_row_bytes(tk):
        # double-buffered native-dtype logits block
        # + ~2x (TN, TK) f32 in-register temporaries (upcast / exp operand)
        # + double-buffered lane-padded (TN, 1)->(TN, 128) int32 targets block
        return 2 * tk * itemsize + 2 * tk * 4 + 2 * 128 * 4

    # Keep the whole class row in one block unless that starves the row tile
    # (need >= ~64 rows to amortize per-step overhead); otherwise split the
    # class axis into 128-aligned chunks reduced with online logsumexp.
    if c <= 4096 or per_row_bytes(c) * 64 <= budget:
        tk = c
    else:
        tk = min(8192, (c // 128) * 128)
        if tk <= 0 or tk >= c:
            tk = c

    tn = budget // max(1, per_row_bytes(tk))
    tn = max(8, (tn // 8) * 8)         # sublane-aligned
    tn = min(tn, 32768)                # diminishing returns past this
    n_up = ((n + 7) // 8) * 8
    tn = min(tn, n_up)
    if n < 8:
        tn = n                         # full-dim block is always layout-legal
    return tn, tk, vmem_cap


def ce_loss(logits, targets):
    """logits: (N, C) float (any dtype); targets: (N,) int class ids. Returns scalar f32."""
    n, c = logits.shape
    targets_2d = targets.astype(jnp.int32).reshape(n, 1)
    itemsize = jnp.dtype(logits.dtype).itemsize

    tn, tk, vmem_cap = _choose_tiles(n, c, itemsize)
    grid = (pl.cdiv(n, tn), pl.cdiv(c, tk))

    kernel = functools.partial(
        _ce_loss_kernel,
        n_valid=n, num_classes=c,
        block_rows=tn, block_cols=tk,
        mask_cols=(c % tk != 0),
    )

    cost = pl.CostEstimate(
        flops=6 * n * c,
        transcendentals=n * c,
        bytes_accessed=n * c * itemsize + n * 4 + grid[0] * 4,
    )
    vmem_limit = int(max(32 * 2 ** 20, min(96 * 2 ** 20, int(0.85 * vmem_cap))))

    partials = pl.pallas_call(
        kernel,
        out_shape=jax.ShapeDtypeStruct((grid[0], 1), jnp.float32),
        grid=grid,
        in_specs=[
            pl.BlockSpec((tn, tk), lambda i, k: (i, k)),   # logits, native dtype
            pl.BlockSpec((tn, 1), lambda i, k: (i, 0)),    # targets
        ],
        out_specs=pl.BlockSpec((1, 1), lambda i, k: (i, 0),
                               memory_space=pltpu.MemorySpace.SMEM),
        scratch_shapes=[
            pltpu.VMEM((tn, 1), jnp.float32),   # running max
            pltpu.VMEM((tn, 1), jnp.float32),   # running sum of exp
            pltpu.VMEM((tn, 1), jnp.float32),   # picked target logit
        ],
        compiler_params=pltpu.CompilerParams(
            dimension_semantics=("parallel", "arbitrary"),
            vmem_limit_bytes=vmem_limit,
        ),
        cost_estimate=cost,
    )(logits, targets_2d)

    # Tiny final reduction + mean in plain JAX (keeps the row axis parallel).
    return jnp.sum(partials) / jnp.float32(n)


def _ce_loss_ref(logits, targets):
    lp = jax.nn.log_softmax(logits.astype(jnp.float32), axis=1)
    oh = jax.nn.one_hot(targets, logits.shape[1], dtype=jnp.float32)
    return -jnp.mean(jnp.sum(lp * oh, axis=1))


if __name__ == "__main__":
    num_class = 10
    batch = 8

    key = jax.random.PRNGKey(0)
    k_logits, k_tgt = jax.random.split(key)
    logits = jax.random.normal(k_logits, (batch, num_class), dtype=jnp.float32)
    targets = jax.random.randint(k_tgt, (batch,), 0, num_class, dtype=jnp.int32)

    loss = ce_loss(logits, targets)
    jax.block_until_ready(loss)

    ref = _ce_loss_ref(logits, targets)
    assert jnp.allclose(loss, ref, atol=1e-5, rtol=1e-5), (loss, ref)

    print("KERNEL_OK")
</pallas_src>

<mosaic_0001>
module attributes {stable_mosaic.version = 11 : i64} {
  func.func @_ce_loss_kernel(%arg0: i32, %arg1: i32, %arg2: memref<8x10xf32, #tpu.memory_space<vmem>>, %arg3: memref<8x1xi32, #tpu.memory_space<vmem>>, %arg4: memref<1x1xf32, #tpu.memory_space<smem>>, %arg5: memref<8x1xf32, #tpu.memory_space<vmem>>, %arg6: memref<8x1xf32, #tpu.memory_space<vmem>>, %arg7: memref<8x1xf32, #tpu.memory_space<vmem>>) attributes {dimension_semantics = [#tpu.dimension_semantics<parallel>, #tpu.dimension_semantics<arbitrary>], iteration_bounds = array<i64: 1, 1>, scalar_prefetch = 0 : i64, scratch_operands = 3 : i64, tpu.core_type = #tpu.core_type<tc>, window_params = [{transform_indices = @transform_0, window_bounds = array<i64: 8, 10>}, {transform_indices = @transform_1, window_bounds = array<i64: 8, 1>}, {transform_indices = @transform_2, window_bounds = array<i64: 1, 1>}]} {
    %c0_i32 = arith.constant 0 : i32
    %0 = arith.cmpi eq, %arg1, %c0_i32 : i32
    %1 = arith.extui %0 : i1 to i32
    %c0_i32_0 = arith.constant 0 : i32
    %2 = arith.cmpi ne, %1, %c0_i32_0 : i32
    scf.if %2 {
      %cst_21 = arith.constant 0xFF800000 : f32
      %38 = vector.broadcast %cst_21 : f32 to vector<8x1xf32>
      %c0_22 = arith.constant 0 : index
      %c0_23 = arith.constant 0 : index
      %39 = vector.load %arg5[%c0_22, %c0_23] : memref<8x1xf32, #tpu.memory_space<vmem>>, vector<8x1xf32>
      tpu.vector_store %arg5[%c0_22, %c0_23], %38 {strides = array<i32>} : memref<8x1xf32, #tpu.memory_space<vmem>>, vector<8x1xf32>,
      %cst_24 = arith.constant 0.000000e+00 : f32
      %40 = vector.broadcast %cst_24 : f32 to vector<8x1xf32>
      %c0_25 = arith.constant 0 : index
      %c0_26 = arith.constant 0 : index
      %41 = vector.load %arg6[%c0_25, %c0_26] : memref<8x1xf32, #tpu.memory_space<vmem>>, vector<8x1xf32>
      tpu.vector_store %arg6[%c0_25, %c0_26], %40 {strides = array<i32>} : memref<8x1xf32, #tpu.memory_space<vmem>>, vector<8x1xf32>,
      %cst_27 = arith.constant 0.000000e+00 : f32
      %42 = vector.broadcast %cst_27 : f32 to vector<8x1xf32>
      %c0_28 = arith.constant 0 : index
      %c0_29 = arith.constant 0 : index
      %43 = vector.load %arg7[%c0_28, %c0_29] : memref<8x1xf32, #tpu.memory_space<vmem>>, vector<8x1xf32>
      tpu.vector_store %arg7[%c0_28, %c0_29], %42 {strides = array<i32>} : memref<8x1xf32, #tpu.memory_space<vmem>>, vector<8x1xf32>,
    } else {
    }
    %c0 = arith.constant 0 : index
    %c0_1 = arith.constant 0 : index
    %3 = vector.load %arg2[%c0, %c0_1] : memref<8x10xf32, #tpu.memory_space<vmem>>, vector<8x10xf32>
    %c0_2 = arith.constant 0 : index
    %c0_3 = arith.constant 0 : index
    %4 = vector.load %arg3[%c0_2, %c0_3] : memref<8x1xi32, #tpu.memory_space<vmem>>, vector<8x1xi32>
    %5 = tpu.iota {dimensions = array<i32: 1>} : vector<1x10xi32>
    %c10_i32 = arith.constant 10 : i32
    %6 = arith.muli %arg1, %c10_i32 : i32
    %7 = vector.broadcast %6 : i32 to vector<1x10xi32>
    %8 = arith.addi %5, %7 : vector<1x10xi32>
    %c0_4 = arith.constant 0 : index
    %c0_5 = arith.constant 0 : index
    %9 = vector.load %arg7[%c0_4, %c0_5] : memref<8x1xf32, #tpu.memory_space<vmem>>, vector<8x1xf32>
    %10 = vector.broadcast %8 : vector<1x10xi32> to vector<8x10xi32>
    %11 = vector.broadcast %4 : vector<8x1xi32> to vector<8x10xi32>
    %12 = arith.cmpi eq, %10, %11 : vector<8x10xi32>
    %cst = arith.constant 0.000000e+00 : f32
    %13 = vector.broadcast %cst : f32 to vector<8x10xf32>
    %14 = arith.select %12, %3, %13 : vector<8x10xi1>, vector<8x10xf32>
    %cst_6 = arith.constant dense<0.000000e+00> : vector<8xf32>
    %15 = vector.multi_reduction <add>, %14, %cst_6 [1] : vector<8x10xf32> to vector<8xf32>
    %16 = vector.shape_cast %15 : vector<8xf32> to vector<8x1xf32>
    %17 = arith.addf %9, %16 : vector<8x1xf32>
    %c0_7 = arith.constant 0 : index
    %c0_8 = arith.constant 0 : index
    %18 = vector.load %arg7[%c0_7, %c0_8] : memref<8x1xf32, #tpu.memory_space<vmem>>, vector<8x1xf32>
    tpu.vector_store %arg7[%c0_7, %c0_8], %17 {strides = array<i32>} : memref<8x1xf32, #tpu.memory_space<vmem>>, vector<8x1xf32>,
    %c0_9 = arith.constant 0 : index
    %c0_10 = arith.constant 0 : index
    %19 = vector.load %arg5[%c0_9, %c0_10] : memref<8x1xf32, #tpu.memory_space<vmem>>, vector<8x1xf32>
    %cst_11 = arith.constant dense<0xFF800000> : vector<8xf32>
    %20 = vector.multi_reduction <maximumf>, %3, %cst_11 [1] : vector<8x10xf32> to vector<8xf32>
    %21 = vector.shape_cast %20 : vector<8xf32> to vector<8x1xf32>
    %22 = arith.maximumf %19, %21 : vector<8x1xf32>
    %c0_12 = arith.constant 0 : index
    %c0_13 = arith.constant 0 : index
    %23 = vector.load %arg6[%c0_12, %c0_13] : memref<8x1xf32, #tpu.memory_space<vmem>>, vector<8x1xf32>
    %24 = arith.subf %19, %22 : vector<8x1xf32>
    %25 = math.exp %24 : vector<8x1xf32>
    %26 = arith.mulf %23, %25 : vector<8x1xf32>
    %27 = vector.broadcast %22 : vector<8x1xf32> to vector<8x10xf32>
    %28 = arith.subf %3, %27 : vector<8x10xf32>
    %29 = math.exp %28 : vector<8x10xf32>
    %cst_14 = arith.constant dense<0.000000e+00> : vector<8xf32>
    %30 = vector.multi_reduction <add>, %29, %cst_14 [1] : vector<8x10xf32> to vector<8xf32>
    %31 = vector.shape_cast %30 : vector<8xf32> to vector<8x1xf32>
    %32 = arith.addf %26, %31 : vector<8x1xf32>
    %c0_15 = arith.constant 0 : index
    %c0_16 = arith.constant 0 : index
    %33 = vector.load %arg6[%c0_15, %c0_16] : memref<8x1xf32, #tpu.memory_space<vmem>>, vector<8x1xf32>
    tpu.vector_store %arg6[%c0_15, %c0_16], %32 {strides = array<i32>} : memref<8x1xf32, #tpu.memory_space<vmem>>, vector<8x1xf32>,
    %c0_17 = arith.constant 0 : index
    %c0_18 = arith.constant 0 : index
    %34 = vector.load %arg5[%c0_17, %c0_18] : memref<8x1xf32, #tpu.memory_space<vmem>>, vector<8x1xf32>
    tpu.vector_store %arg5[%c0_17, %c0_18], %22 {strides = array<i32>} : memref<8x1xf32, #tpu.memory_space<vmem>>, vector<8x1xf32>,
    %c0_i32_19 = arith.constant 0 : i32
    %35 = arith.cmpi eq, %arg1, %c0_i32_19 : i32
    %36 = arith.extui %35 : i1 to i32
    %c0_i32_20 = arith.constant 0 : i32
    %37 = arith.cmpi ne, %36, %c0_i32_20 : i32
    scf.if %37 {
      %c0_21 = arith.constant 0 : index
      %c0_22 = arith.constant 0 : index
      %38 = vector.load %arg5[%c0_21, %c0_22] : memref<8x1xf32, #tpu.memory_space<vmem>>, vector<8x1xf32>
      %c0_23 = arith.constant 0 : index
      %c0_24 = arith.constant 0 : index
      %39 = vector.load %arg6[%c0_23, %c0_24] : memref<8x1xf32, #tpu.memory_space<vmem>>, vector<8x1xf32>
      %40 = math.log %39 : vector<8x1xf32>
      %41 = arith.addf %38, %40 : vector<8x1xf32>
      %c0_25 = arith.constant 0 : index
      %c0_26 = arith.constant 0 : index
      %42 = vector.load %arg7[%c0_25, %c0_26] : memref<8x1xf32, #tpu.memory_space<vmem>>, vector<8x1xf32>
      %43 = arith.subf %41, %42 : vector<8x1xf32>
      %44 = tpu.iota {dimensions = array<i32: 0>} : vector<8x1xi32>
      %c8_i32 = arith.constant 8 : i32
      %45 = arith.muli %arg0, %c8_i32 : i32
      %46 = vector.broadcast %45 : i32 to vector<8x1xi32>
      %47 = arith.addi %44, %46 : vector<8x1xi32>
      %c8_i32_27 = arith.constant 8 : i32
      %48 = vector.broadcast %c8_i32_27 : i32 to vector<8x1xi32>
      %49 = arith.cmpi slt, %47, %48 : vector<8x1xi32>
      %cst_28 = arith.constant 0.000000e+00 : f32
      %50 = vector.broadcast %cst_28 : f32 to vector<8x1xf32>
      %51 = arith.select %49, %43, %50 : vector<8x1xi1>, vector<8x1xf32>
      %52 = vector.shape_cast %51 : vector<8x1xf32> to vector<1x8x1xf32>
      %cst_29 = arith.constant dense<0.000000e+00> : vector<1xf32>
      %53 = vector.multi_reduction <add>, %52, %cst_29 [1, 2] : vector<1x8x1xf32> to vector<1xf32>
      %54 = vector.shape_cast %53 : vector<1xf32> to vector<1x1x1xf32>
      %55 = vector.extract %54[0, 0, 0] : f32 from vector<1x1x1xf32>
      %c0_30 = arith.constant 0 : index
      %c0_31 = arith.constant 0 : index
      %56 = memref.load %arg4[%c0_30, %c0_31] : memref<1x1xf32, #tpu.memory_space<smem>>
      memref.store %55, %arg4[%c0_30, %c0_31] : memref<1x1xf32, #tpu.memory_space<smem>>
    } else {
    }
    return
  }
  func.func @transform_0(%arg0: i32, %arg1: i32) -> (i32, i32) {
    %c0_i32 = arith.constant 0 : i32
    return %arg0, %arg1 : i32, i32
  }
  func.func @transform_1(%arg0: i32, %arg1: i32) -> (i32, i32) {
    %c0_i32 = arith.constant 0 : i32
    %c0_i32_0 = arith.constant 0 : i32
    return %arg0, %c0_i32 : i32, i32
  }
  func.func @transform_2(%arg0: i32, %arg1: i32) -> (i32, i32) {
    %c0_i32 = arith.constant 0 : i32
    %c0_i32_0 = arith.constant 0 : i32
    return %arg0, %c0_i32 : i32, i32
  }
}

</mosaic_0001>

<bundles_post_ra>
// kernel: tpu_custom_call.1
= control target key start
LH: loop header
LB: loop body
LE: loop exit
PB: predicated region body
PF: predicated region fallthrough
CT: control target
= control target key end

     0   :  { %vm33_vm0 = vcmask 80896   ;;  %s179_s0 = inlined_call_operand.vmem [shape: f32[8,10], index: 0, kind: input, shape index: {}]   ;;  %s180_s1 = inlined_call_operand.vmem [shape: s32[8,1], index: 1, kind: input, shape index: {}]   ;;  %s181_s2 = inlined_call_operand.hbm [shape: f32[1,1], index: 2, kind: output, shape index: {}]  }
   0x1   :  { %v20_v0 = vld [vmem:[%s179_s0] sm:$0xff] }
   0x2   :  { %7 = vsyncpa [#allocation6], 0  ;;  %v41_v1 = vsel %vm33_vm0, %v20_v0, -inf  ;;  %vm16_vm1 = vcmask 7168   ;;  %v132_v2 = vmov -inf   ;;  %v133_v3 = vmov 0  }
   0x3   :  { %42 = vmax.xlane.f32.xlu0 %v41_v1  ;;  %17 = vst.msk [vmem:[#allocation2] sm:$0xff] %vm16_vm1, %v132_v2  ;;  %113 = vset.pattern.permute.xlu1 %v133_v3  ;;  %v21_v4 = vld [vmem:[%s180_s1] sm:$0xff]  ;;  %v134_v5 = vmov 0.0   ;;  %v22_v13 = vlaneseq  ;;  %s120_s14 = scalar_lea.hbm %s181_s2, 16 }
   0x4   :  { %112 = vset.pattern.permute.xlu0 %v133_v3  ;;  %29 = vperm.xlu1 %113, %v21_v4   ;;  %18 = vst.msk [vmem:[#allocation3] sm:$0xff] %vm16_vm1, %v134_v5  ;;  %19 = vst.msk [vmem:[#allocation4] sm:$0xff] %vm16_vm1, %v134_v5  ;;  %p121_p0 = scmp.ne.s32.totalorder %s181_s2, %s120_s14  ;;  %p124_p1 = scmp.lt.u32.totalorder %s120_s14, %s181_s2 }
   0x5   :  { %v23_v14 = vand.u32 127, %v22_v13 }
   0x6   :  { %p126_p2 = pnand %p124_p1, %p121_p0 }
   0xa   :  { %v40_v6 = vld [vmem:[#allocation2] sm:$0xff] }
   0xb   :  { %v45_v22 = vld [vmem:[#allocation3] sm:$0xff]  ;;  %v27_v26 = vld [vmem:[#allocation4] sm:$0xff] }
  0x83   :  { %v30_v15 = vpop.permute.xlu1 %29 }
  0x84   :  { %vm31_vm2 = vcmp.eq.s32.totalorder %v23_v14, %v30_v15 }
  0x85   :  { %v32_v17 = vsel %vm31_vm2, %v20_v0, 0.0 }
  0x86   :  { %v34_v19 = vsel %vm33_vm0, %v32_v17, 0.0 }
  0x90   :  { %v43_v7 = vpop.xlane.xlu0 %42 }
  0x91   :  { %v44_v8 = vmax.f32 %v40_v6, %v43_v7 }
  0x93   :  { %v46_v9 = vsub.f32 %v40_v6, %v44_v8  ;;  %63 = vst.msk [vmem:[#allocation2] sm:$0xff] %vm16_vm1, %v44_v8  ;;  %52 = vperm.xlu0 %112, %v44_v8  }
  0x95   :  { %v47_v20 = vmul.f32 1.442695, %v46_v9 }
  0x9a   :  { %v67_v32 = vld [vmem:[#allocation2] sm:$0xff] }
 0x112   :  { %v53_v10 = vpop.permute.xlu0 %52 }
 0x113   :  { %v55_v11 = vsub.f32 %v20_v0, %v53_v10 }
 0x115   :  { %v56_v12 = vmul.f32 1.442695, %v55_v11 }
 0x117   :  { %114 = vpow2.f32 %v56_v12 }
 0x118   :  { %116 = vpow2.f32 %v47_v20 }
 0x121   :  { %v115_v16 = vpop.eup %114 }
 0x122   :  { %v58_v18 = vsel %vm33_vm0, %v115_v16, 0.0  ;;  %v117_v21 = vpop.eup %116 }
 0x123   :  { %59 = vadd.xlane.f32.xlu1 %v58_v18  ;;  %v49_v23 = vmul.f32 %v117_v21, %v45_v22 }
 0x127   :  { %35 = vadd.xlane.f32.xlu1 %v34_v19 }
 0x1b0   :  { %v60_v24 = vpop.xlane.xlu1 %59 }
 0x1b1   :  { %v61_v25 = vadd.f32 %v60_v24, %v49_v23 }
 0x1b3   :  { %62 = vst.msk [vmem:[#allocation3] sm:$0xff] %vm16_vm1, %v61_v25 }
 0x1b4   :  { %v36_v27 = vpop.xlane.xlu1 %35 }
 0x1b5   :  { %v37_v28 = vadd.f32 %v36_v27, %v27_v26 }
 0x1b7   :  { %39 = vst.msk [vmem:[#allocation4] sm:$0xff] %vm16_vm1, %v37_v28 }
 0x1ba   :  { %v68_v29 = vld [vmem:[#allocation3] sm:$0xff] }
 0x1bb   :  { %118 = vlog2.f32 %v68_v29 }
 0x1be   :  { %v72_v33 = vld [vmem:[#allocation4] sm:$0xff] }
 0x1c5   :  { %v119_v30 = vpop.eup %118 }
 0x1c6   :  { %v70_v31 = vmul.f32 0.6931472, %v119_v30 }
 0x1c8   :  { %v71_v34 = vadd.f32 %v70_v31, %v67_v32 }
 0x1ca   :  { %v73_v35 = vsub.f32 %v71_v34, %v72_v33 }
 0x1cc   :  { %v81_v36 = vsel %vm16_vm1, %v73_v35, 0.0 }
 0x1cd   :  { %82 = vadd.xlane.f32.xlu1 %v81_v36 }
 0x25a   :  { %v83_v37 = vpop.xlane.xlu1 %82 }
 0x25b   :  { %v84_v38 = vrot.slane %v83_v37, 4 }
 0x25d   :  { %v85_v39 = vadd.f32 %v84_v38, %v83_v37 }
 0x25f   :  { %v86_v40 = vrot.slane %v85_v39, 2 }
 0x261   :  { %v87_v41 = vadd.f32 %v86_v40, %v85_v39 }
 0x263   :  { %v88_v42 = vrot.slane %v87_v41, 1 }
 0x265   :  { %v89_v43 = vadd.f32 %v88_v42, %v87_v41 }
 0x267   :  { %106 = vpush %v89_v43 }
 0x298   :  { %s107_s0 = spop %106 }
 0x299   :  { %92 = sst [smem:[#allocation5]] %s107_s0 }
 0x29a   :  { %129 = shalt.err (!%p126_p2)
}
 0x29b   :  { %s135_s19 = smov [#allocation5]  }
 0x29c   :  { %100 = dma.smem_to_hbm %s135_s19, 16, %s181_s2, [#allocation6]  }
 0x29d   :  { %130 = dma.done.wait [#allocation6], 16  }
 0x29e   :  { %131 = vsyncadd [#allocation6], 4294967280 }
 0x29f   :  { %104 = sfence }
 0x2a0   :  { %105 = vsyncpa [#allocation6], 1 }

</bundles_post_ra>
